<compile_context>
chip_gen: v7x
topology: tpu7x:2x2x1
jax: 0.10.0
libtpu: 0.0.40
codegen_flags: <defaults>
</compile_context>

<pallas_src>
import functools

import jax
import jax.numpy as jnp
from jax import lax
from jax.experimental import pallas as pl
from jax.experimental.pallas import tpu as pltpu

LANES = 128          # TPU lane width: every channel/vocab/tag dim is padded to this
NEG_INF = -1e30      # fill value for padded / invalid tag lanes


def _round_up(x, m):
    return ((x + m - 1) // m) * m


# ---------------------------------------------------------------------------
# Fused forward kernel
# ---------------------------------------------------------------------------

def make_fused_kernel(B, S, VP, CP, kernel_sizes, T, TPAD, PL, PR, word_pad_idx):
    """Build the fused forward kernel for a fixed (static) configuration.

    Kernel ref order:
      inputs : words(B*S,1) i32, tags(B*S,1) i32, table(VP,CP) bf16,
               [conv_w(K,CP,CP) bf16] * L, [conv_b(1,CP) f32] * L,
               fc_w(CP,TPAD) bf16, fc_b(1,TPAD) f32
      outputs: ed_out(B,S,TPAD) f32, loss(1,1) f32
      scratch: h_pad(B, S+PL+PR, CP) f32   (zero-halo conv staging buffer)
    """
    L = len(kernel_sizes)
    BS = B * S

    def kernel(words_ref, tags_ref, table_ref, *rest):
        conv_w_refs = rest[:L]
        conv_b_refs = rest[L:2 * L]
        fc_w_ref = rest[2 * L]
        fc_b_ref = rest[2 * L + 1]
        ed_out_ref = rest[2 * L + 2]
        loss_ref = rest[2 * L + 3]
        h_pad = rest[2 * L + 4]

        words = words_ref[...]                                   # (BS, 1) int32
        tags = tags_ref[...]                                     # (BS, 1) int32

        # Zero the halo scratch once; the halo rows are never written again, so
        # every shifted tap view below reads exact zeros outside the sequence.
        h_pad[...] = jnp.zeros_like(h_pad)

        # --- Embedding: one-hot(BS,VP) @ table(VP,CP) on the bf16 MXU path ----
        onehot = (lax.broadcasted_iota(jnp.int32, (BS, VP), 1) == words
                  ).astype(jnp.bfloat16)
        h = jnp.dot(onehot, table_ref[...],
                    preferred_element_type=jnp.float32)          # (BS, CP) f32

        # --- CNN encoder: K accumulated (BS,CP)@(CP,CP) dots over static
        #     sublane-shifted views of the zero-halo scratch (no concats). -----
        for li, K in enumerate(kernel_sizes):
            pad_l = (K - 1) // 2
            h_pad[:, PL:PL + S, :] = h.reshape(B, S, CP)         # stage layer input
            acc = jnp.zeros((BS, CP), jnp.float32)
            for k in range(K):                                   # static unroll
                off = PL - pad_l + k
                lhs = (h_pad[:, off:off + S, :]
                       .reshape(BS, CP).astype(jnp.bfloat16))    # shifted tap view
                acc = acc + jnp.dot(lhs, conv_w_refs[li][k],
                                    preferred_element_type=jnp.float32)
            h = jnp.maximum(acc + conv_b_refs[li][...], 0.0)     # bias + ReLU (f32)

        # --- Final FC to lane-dense (TPAD=128) tag logits ----------------------
        logits = (jnp.dot(h.astype(jnp.bfloat16), fc_w_ref[...],
                          preferred_element_type=jnp.float32)
                  + fc_b_ref[...])                               # (BS, TPAD) f32
        col = lax.broadcasted_iota(jnp.int32, (BS, TPAD), 1)
        neg = jnp.where(col < T, logits, NEG_INF)                # pad lanes -> -inf-ish
        ed_out_ref[...] = neg.reshape(B, S, TPAD)                # unmasked full-lane store

        # --- Padding-masked mean cross-entropy, finalized in-kernel -----------
        m = jnp.max(neg, axis=-1, keepdims=True)                 # (BS, 1)
        lse = m + jnp.log(jnp.sum(jnp.exp(neg - m), axis=-1, keepdims=True))
        tgt = jnp.sum(jnp.where(col == tags, logits, 0.0),
                      axis=-1, keepdims=True)                    # (BS, 1)
        mask = (words != word_pad_idx).astype(jnp.float32)       # (BS, 1)
        nll = (lse - tgt) * mask
        nll_sum = jnp.sum(nll, axis=0, keepdims=True)            # (1, 1)
        cnt = jnp.sum(mask, axis=0, keepdims=True)               # (1, 1)
        loss_ref[...] = nll_sum * pl.reciprocal(jnp.maximum(cnt, 1.0), approx=False)

    return kernel


# ---------------------------------------------------------------------------
# Parameter construction / preparation
# ---------------------------------------------------------------------------

def init_params(key, vocab, emb_dim, cnn_out, cnn_kernels, num_tags, word_pad_idx):
    """Reference-style f32 parameters (emb table, conv stack, final linear)."""
    ks = jax.random.split(key, 3 + len(cnn_kernels))
    emb = 0.1 * jax.random.normal(ks[0], (vocab, emb_dim), jnp.float32)
    emb = emb.at[word_pad_idx].set(0.0)                    # padding_idx row = 0
    convs = []
    c_in = emb_dim
    for i, k in enumerate(cnn_kernels):
        fan = c_in * k
        w = jax.random.normal(ks[1 + i], (k, c_in, cnn_out), jnp.float32) / jnp.sqrt(fan)
        b = jnp.zeros((1, cnn_out), jnp.float32)
        convs.append((w, b))
        c_in = cnn_out
    fc_w = jax.random.normal(ks[-2], (cnn_out, num_tags), jnp.float32) / jnp.sqrt(cnn_out)
    fc_b = jnp.zeros((1, num_tags), jnp.float32)
    return {"emb": emb, "convs": convs, "fc": (fc_w, fc_b)}


def prepare_params(params, num_tags):
    """One-time prep: pad every vocab/channel/tag dim to 128 lanes and cast the
    MXU operands (table, conv weights, fc weights) to bf16.  Biases stay f32."""
    emb = params["emb"]
    V, E = emb.shape
    chans = [E, params["fc"][0].shape[0]]
    for (w, _) in params["convs"]:
        chans += [w.shape[1], w.shape[2]]
    CP = _round_up(max(chans), LANES)
    VP = _round_up(V, LANES)
    TPAD = _round_up(num_tags, LANES)

    table = jnp.zeros((VP, CP), jnp.bfloat16).at[:V, :E].set(emb.astype(jnp.bfloat16))

    conv_ws, conv_bs = [], []
    for (w, b) in params["convs"]:
        K, ci, co = w.shape
        wp = jnp.zeros((K, CP, CP), jnp.bfloat16).at[:, :ci, :co].set(w.astype(jnp.bfloat16))
        bp = jnp.zeros((1, CP), jnp.float32).at[:, :co].set(b)
        conv_ws.append(wp)
        conv_bs.append(bp)

    fc_w, fc_b = params["fc"]
    H, T = fc_w.shape
    fwp = jnp.zeros((CP, TPAD), jnp.bfloat16).at[:H, :T].set(fc_w.astype(jnp.bfloat16))
    fbp = jnp.zeros((1, TPAD), jnp.float32).at[:, :T].set(fc_b)

    return {"table": table, "conv_w": tuple(conv_ws), "conv_b": tuple(conv_bs),
            "fc_w": fwp, "fc_b": fbp}


# ---------------------------------------------------------------------------
# Model_ED forward (cnn_seq config)
# ---------------------------------------------------------------------------

@functools.partial(jax.jit, static_argnames=("num_tags", "word_pad_idx"))
def model_ed_forward(prepped, words, tags, *, num_tags, word_pad_idx=0):
    """Equivalent of Model_ED.forward(words, chars=None, entities=None, tags=tags).

    Returns:
      ed_out_padded : (B, S, TPAD) f32 lane-dense logits.  Valid tag logits live
                      in lanes [:num_tags]; padded lanes are filled with -1e30
                      (argmax over the padded output is still correct).  The
                      slice to [:num_tags] is intentionally left to the final
                      consumer to avoid an extra HBM round-trip in this jit.
      loss          : (1, 1) f32 padding-masked mean cross-entropy (finalized
                      in-kernel).
    NOTE: the PyTorch forward does `print(word_features[0])`; that host-side
    debug side effect is intentionally omitted.
    """
    table = prepped["table"]
    conv_ws = prepped["conv_w"]
    conv_bs = prepped["conv_b"]
    fc_w = prepped["fc_w"]
    fc_b = prepped["fc_b"]

    B, S = words.shape
    VP, CP = table.shape
    TPAD = fc_w.shape[1]
    kernel_sizes = tuple(int(w.shape[0]) for w in conv_ws)
    PL = max((k - 1) // 2 for k in kernel_sizes)
    PR = max(k - 1 - (k - 1) // 2 for k in kernel_sizes)
    BS = B * S

    kernel = make_fused_kernel(B, S, VP, CP, kernel_sizes, num_tags, TPAD,
                               PL, PR, word_pad_idx)

    # (B,S) -> (B*S,1): pure row-major reshape, puts tokens on sublanes so the
    # in-kernel iota compares / masks need no relayout of the token ids.
    words2 = words.astype(jnp.int32).reshape(BS, 1)
    tags2 = tags.astype(jnp.int32).reshape(BS, 1)

    # Advisory cost + explicit VMEM budget for the single fused call.
    flops = (2 * BS * VP * CP
             + sum(2 * BS * k * CP * CP for k in kernel_sizes)
             + 2 * BS * CP * TPAD)
    transcendentals = BS * (TPAD + 2)
    in_bytes = ((words2.size + tags2.size) * 4 + table.size * 2
                + sum(w.size * 2 for w in conv_ws) + sum(b.size * 4 for b in conv_bs)
                + fc_w.size * 2 + fc_b.size * 4)
    out_bytes = B * S * TPAD * 4 + 4
    scratch_bytes = B * (S + PL + PR) * CP * 4
    vmem_limit = int(min(64 * 2**20,
                         max(8 * 2**20, 4 * (in_bytes + out_bytes + scratch_bytes))))

    # Single block, no grid: the whole working set stays in VMEM/vregs; only the
    # lane-dense logits and one (1,1) loss scalar are written back to HBM.
    # (No dimension_semantics: there is no grid axis at this size.)
    ed_out_padded, loss = pl.pallas_call(
        kernel,
        out_shape=(
            jax.ShapeDtypeStruct((B, S, TPAD), jnp.float32),
            jax.ShapeDtypeStruct((1, 1), jnp.float32),
        ),
        scratch_shapes=[pltpu.VMEM((B, S + PL + PR, CP), jnp.float32)],
        compiler_params=pltpu.CompilerParams(vmem_limit_bytes=vmem_limit),
        cost_estimate=pl.CostEstimate(flops=flops,
                                      transcendentals=transcendentals,
                                      bytes_accessed=in_bytes + out_bytes),
    )(words2, tags2, table, *conv_ws, *conv_bs, fc_w, fc_b)

    return ed_out_padded, loss


# ---------------------------------------------------------------------------
# Demo
# ---------------------------------------------------------------------------

if __name__ == "__main__":
    B, S = 2, 16          # batch, sequence length
    V = 48                # word_input_dim (vocab)
    E = 32                # word_emb_dim
    C = 32                # cnn_out_channel
    KERNELS = (3, 3)      # cnn_kernels (applied sequentially)
    T = 8                 # len(tag_names)
    WORD_PAD = 0          # word_pad_idx

    key = jax.random.PRNGKey(0)
    k_words, k_tags, k_params = jax.random.split(key, 3)

    words = jax.random.randint(k_words, (B, S), 1, V, dtype=jnp.int32)
    words = words.at[1, S - 4:].set(WORD_PAD)                 # padded tail
    tags = jax.random.randint(k_tags, (B, S), 0, T, dtype=jnp.int32)

    params = init_params(k_params, V, E, C, KERNELS, T, WORD_PAD)
    prepped = prepare_params(params, T)                       # one-time pad + bf16 cast

    ed_out_padded, loss = model_ed_forward(prepped, words, tags,
                                           num_tags=T, word_pad_idx=WORD_PAD)
    jax.block_until_ready((ed_out_padded, loss))

    # Slice-at-consumer contract: valid tag logits are lanes [:T].
    ed_out = ed_out_padded[..., :T]
    ed_loss = loss[0, 0]

    assert ed_out_padded.shape == (B, S, 128)
    assert ed_out.shape == (B, S, T)
    assert loss.shape == (1, 1)
    assert bool(jnp.isfinite(ed_loss))
    assert bool(jnp.all(jnp.isfinite(ed_out)))
    print("KERNEL_OK")
</pallas_src>

<mosaic_0001>
module attributes {stable_mosaic.version = 11 : i64} {
  func.func @kernel(%arg0: memref<32x1xi32, #tpu.memory_space<vmem>>, %arg1: memref<32x1xi32, #tpu.memory_space<vmem>>, %arg2: memref<128x128xbf16, #tpu.memory_space<vmem>>, %arg3: memref<3x128x128xbf16, #tpu.memory_space<vmem>>, %arg4: memref<3x128x128xbf16, #tpu.memory_space<vmem>>, %arg5: memref<1x128xf32, #tpu.memory_space<vmem>>, %arg6: memref<1x128xf32, #tpu.memory_space<vmem>>, %arg7: memref<128x128xbf16, #tpu.memory_space<vmem>>, %arg8: memref<1x128xf32, #tpu.memory_space<vmem>>, %arg9: memref<2x16x128xf32, #tpu.memory_space<vmem>>, %arg10: memref<1x1xf32, #tpu.memory_space<vmem>>, %arg11: memref<2x18x128xf32, #tpu.memory_space<vmem>>) attributes {dimension_semantics = [], scalar_prefetch = 0 : i64, scratch_operands = 1 : i64, tpu.core_type = #tpu.core_type<tc>} {
    %c0 = arith.constant 0 : index
    %c0_0 = arith.constant 0 : index
    %0 = vector.load %arg0[%c0, %c0_0] : memref<32x1xi32, #tpu.memory_space<vmem>>, vector<32x1xi32>
    %c0_1 = arith.constant 0 : index
    %c0_2 = arith.constant 0 : index
    %1 = vector.load %arg1[%c0_1, %c0_2] : memref<32x1xi32, #tpu.memory_space<vmem>>, vector<32x1xi32>
    %cst = arith.constant 0.000000e+00 : f32
    %2 = vector.broadcast %cst : f32 to vector<2x18x128xf32>
    %c0_3 = arith.constant 0 : index
    %c0_4 = arith.constant 0 : index
    %c0_5 = arith.constant 0 : index
    %3 = vector.load %arg11[%c0_3, %c0_4, %c0_5] : memref<2x18x128xf32, #tpu.memory_space<vmem>>, vector<2x18x128xf32>
    tpu.vector_store %arg11[%c0_3, %c0_4, %c0_5], %2 {strides = array<i32>} : memref<2x18x128xf32, #tpu.memory_space<vmem>>, vector<2x18x128xf32>,
    %4 = tpu.iota {dimensions = array<i32: 1>} : vector<32x128xi32>
    %5 = vector.broadcast %0 : vector<32x1xi32> to vector<32x128xi32>
    %6 = arith.cmpi eq, %4, %5 : vector<32x128xi32>
    %7 = arith.extui %6 : vector<32x128xi1> to vector<32x128xi32>
    %8 = arith.sitofp %7 : vector<32x128xi32> to vector<32x128xf32>
    %9 = arith.truncf %8 : vector<32x128xf32> to vector<32x128xbf16>
    %c0_6 = arith.constant 0 : index
    %c0_7 = arith.constant 0 : index
    %10 = vector.load %arg2[%c0_6, %c0_7] : memref<128x128xbf16, #tpu.memory_space<vmem>>, vector<128x128xbf16>
    %cst_8 = arith.constant dense<0.000000e+00> : vector<32x128xf32>
    %11 = tpu.matmul %9, %10, %cst_8 {dimension_numbers = #tpu.dot_dimension_numbers<[1], [0], [0], [1], [0, 0, 1, 1], [], []>} : vector<32x128xbf16>, vector<128x128xbf16>, vector<32x128xf32> -> vector<32x128xf32>
    %12 = vector.shape_cast %11 : vector<32x128xf32> to vector<2x16x128xf32>
    %c0_9 = arith.constant 0 : index
    %c1 = arith.constant 1 : index
    %c0_10 = arith.constant 0 : index
    %13 = vector.load %arg11[%c0_9, %c1, %c0_10] : memref<2x18x128xf32, #tpu.memory_space<vmem>>, vector<2x16x128xf32>
    tpu.vector_store %arg11[%c0_9, %c1, %c0_10], %12 {strides = array<i32>} : memref<2x18x128xf32, #tpu.memory_space<vmem>>, vector<2x16x128xf32>,
    %cst_11 = arith.constant 0.000000e+00 : f32
    %14 = vector.broadcast %cst_11 : f32 to vector<32x128xf32>
    %c0_12 = arith.constant 0 : index
    %c0_13 = arith.constant 0 : index
    %c0_14 = arith.constant 0 : index
    %15 = vector.load %arg11[%c0_12, %c0_13, %c0_14] : memref<2x18x128xf32, #tpu.memory_space<vmem>>, vector<2x16x128xf32>
    %16 = vector.shape_cast %15 : vector<2x16x128xf32> to vector<32x128xf32>
    %17 = arith.truncf %16 : vector<32x128xf32> to vector<32x128xbf16>
    %c0_15 = arith.constant 0 : index
    %c0_16 = arith.constant 0 : index
    %c0_17 = arith.constant 0 : index
    %18 = vector.load %arg3[%c0_15, %c0_16, %c0_17] : memref<3x128x128xbf16, #tpu.memory_space<vmem>>, vector<1x128x128xbf16>
    %19 = vector.shape_cast %18 : vector<1x128x128xbf16> to vector<128x128xbf16>
    %cst_18 = arith.constant dense<0.000000e+00> : vector<32x128xf32>
    %20 = tpu.matmul %17, %19, %cst_18 {dimension_numbers = #tpu.dot_dimension_numbers<[1], [0], [0], [1], [0, 0, 1, 1], [], []>} : vector<32x128xbf16>, vector<128x128xbf16>, vector<32x128xf32> -> vector<32x128xf32>
    %21 = arith.addf %14, %20 : vector<32x128xf32>
    %c0_19 = arith.constant 0 : index
    %c1_20 = arith.constant 1 : index
    %c0_21 = arith.constant 0 : index
    %22 = vector.load %arg11[%c0_19, %c1_20, %c0_21] : memref<2x18x128xf32, #tpu.memory_space<vmem>>, vector<2x16x128xf32>
    %23 = vector.shape_cast %22 : vector<2x16x128xf32> to vector<32x128xf32>
    %24 = arith.truncf %23 : vector<32x128xf32> to vector<32x128xbf16>
    %c1_22 = arith.constant 1 : index
    %c0_23 = arith.constant 0 : index
    %c0_24 = arith.constant 0 : index
    %25 = vector.load %arg3[%c1_22, %c0_23, %c0_24] : memref<3x128x128xbf16, #tpu.memory_space<vmem>>, vector<1x128x128xbf16>
    %26 = vector.shape_cast %25 : vector<1x128x128xbf16> to vector<128x128xbf16>
    %cst_25 = arith.constant dense<0.000000e+00> : vector<32x128xf32>
    %27 = tpu.matmul %24, %26, %cst_25 {dimension_numbers = #tpu.dot_dimension_numbers<[1], [0], [0], [1], [0, 0, 1, 1], [], []>} : vector<32x128xbf16>, vector<128x128xbf16>, vector<32x128xf32> -> vector<32x128xf32>
    %28 = arith.addf %21, %27 : vector<32x128xf32>
    %c0_26 = arith.constant 0 : index
    %c2 = arith.constant 2 : index
    %c0_27 = arith.constant 0 : index
    %29 = vector.load %arg11[%c0_26, %c2, %c0_27] : memref<2x18x128xf32, #tpu.memory_space<vmem>>, vector<2x16x128xf32>
    %30 = vector.shape_cast %29 : vector<2x16x128xf32> to vector<32x128xf32>
    %31 = arith.truncf %30 : vector<32x128xf32> to vector<32x128xbf16>
    %c2_28 = arith.constant 2 : index
    %c0_29 = arith.constant 0 : index
    %c0_30 = arith.constant 0 : index
    %32 = vector.load %arg3[%c2_28, %c0_29, %c0_30] : memref<3x128x128xbf16, #tpu.memory_space<vmem>>, vector<1x128x128xbf16>
    %33 = vector.shape_cast %32 : vector<1x128x128xbf16> to vector<128x128xbf16>
    %cst_31 = arith.constant dense<0.000000e+00> : vector<32x128xf32>
    %34 = tpu.matmul %31, %33, %cst_31 {dimension_numbers = #tpu.dot_dimension_numbers<[1], [0], [0], [1], [0, 0, 1, 1], [], []>} : vector<32x128xbf16>, vector<128x128xbf16>, vector<32x128xf32> -> vector<32x128xf32>
    %35 = arith.addf %28, %34 : vector<32x128xf32>
    %c0_32 = arith.constant 0 : index
    %c0_33 = arith.constant 0 : index
    %36 = vector.load %arg5[%c0_32, %c0_33] : memref<1x128xf32, #tpu.memory_space<vmem>>, vector<1x128xf32>
    %37 = vector.broadcast %36 : vector<1x128xf32> to vector<32x128xf32>
    %38 = arith.addf %35, %37 : vector<32x128xf32>
    %cst_34 = arith.constant 0.000000e+00 : f32
    %39 = vector.broadcast %cst_34 : f32 to vector<32x128xf32>
    %40 = arith.maximumf %38, %39 : vector<32x128xf32>
    %41 = vector.shape_cast %40 : vector<32x128xf32> to vector<2x16x128xf32>
    %c0_35 = arith.constant 0 : index
    %c1_36 = arith.constant 1 : index
    %c0_37 = arith.constant 0 : index
    %42 = vector.load %arg11[%c0_35, %c1_36, %c0_37] : memref<2x18x128xf32, #tpu.memory_space<vmem>>, vector<2x16x128xf32>
    tpu.vector_store %arg11[%c0_35, %c1_36, %c0_37], %41 {strides = array<i32>} : memref<2x18x128xf32, #tpu.memory_space<vmem>>, vector<2x16x128xf32>,
    %cst_38 = arith.constant 0.000000e+00 : f32
    %43 = vector.broadcast %cst_38 : f32 to vector<32x128xf32>
    %c0_39 = arith.constant 0 : index
    %c0_40 = arith.constant 0 : index
    %c0_41 = arith.constant 0 : index
    %44 = vector.load %arg11[%c0_39, %c0_40, %c0_41] : memref<2x18x128xf32, #tpu.memory_space<vmem>>, vector<2x16x128xf32>
    %45 = vector.shape_cast %44 : vector<2x16x128xf32> to vector<32x128xf32>
    %46 = arith.truncf %45 : vector<32x128xf32> to vector<32x128xbf16>
    %c0_42 = arith.constant 0 : index
    %c0_43 = arith.constant 0 : index
    %c0_44 = arith.constant 0 : index
    %47 = vector.load %arg4[%c0_42, %c0_43, %c0_44] : memref<3x128x128xbf16, #tpu.memory_space<vmem>>, vector<1x128x128xbf16>
    %48 = vector.shape_cast %47 : vector<1x128x128xbf16> to vector<128x128xbf16>
    %cst_45 = arith.constant dense<0.000000e+00> : vector<32x128xf32>
    %49 = tpu.matmul %46, %48, %cst_45 {dimension_numbers = #tpu.dot_dimension_numbers<[1], [0], [0], [1], [0, 0, 1, 1], [], []>} : vector<32x128xbf16>, vector<128x128xbf16>, vector<32x128xf32> -> vector<32x128xf32>
    %50 = arith.addf %43, %49 : vector<32x128xf32>
    %c0_46 = arith.constant 0 : index
    %c1_47 = arith.constant 1 : index
    %c0_48 = arith.constant 0 : index
    %51 = vector.load %arg11[%c0_46, %c1_47, %c0_48] : memref<2x18x128xf32, #tpu.memory_space<vmem>>, vector<2x16x128xf32>
    %52 = vector.shape_cast %51 : vector<2x16x128xf32> to vector<32x128xf32>
    %53 = arith.truncf %52 : vector<32x128xf32> to vector<32x128xbf16>
    %c1_49 = arith.constant 1 : index
    %c0_50 = arith.constant 0 : index
    %c0_51 = arith.constant 0 : index
    %54 = vector.load %arg4[%c1_49, %c0_50, %c0_51] : memref<3x128x128xbf16, #tpu.memory_space<vmem>>, vector<1x128x128xbf16>
    %55 = vector.shape_cast %54 : vector<1x128x128xbf16> to vector<128x128xbf16>
    %cst_52 = arith.constant dense<0.000000e+00> : vector<32x128xf32>
    %56 = tpu.matmul %53, %55, %cst_52 {dimension_numbers = #tpu.dot_dimension_numbers<[1], [0], [0], [1], [0, 0, 1, 1], [], []>} : vector<32x128xbf16>, vector<128x128xbf16>, vector<32x128xf32> -> vector<32x128xf32>
    %57 = arith.addf %50, %56 : vector<32x128xf32>
    %c0_53 = arith.constant 0 : index
    %c2_54 = arith.constant 2 : index
    %c0_55 = arith.constant 0 : index
    %58 = vector.load %arg11[%c0_53, %c2_54, %c0_55] : memref<2x18x128xf32, #tpu.memory_space<vmem>>, vector<2x16x128xf32>
    %59 = vector.shape_cast %58 : vector<2x16x128xf32> to vector<32x128xf32>
    %60 = arith.truncf %59 : vector<32x128xf32> to vector<32x128xbf16>
    %c2_56 = arith.constant 2 : index
    %c0_57 = arith.constant 0 : index
    %c0_58 = arith.constant 0 : index
    %61 = vector.load %arg4[%c2_56, %c0_57, %c0_58] : memref<3x128x128xbf16, #tpu.memory_space<vmem>>, vector<1x128x128xbf16>
    %62 = vector.shape_cast %61 : vector<1x128x128xbf16> to vector<128x128xbf16>
    %cst_59 = arith.constant dense<0.000000e+00> : vector<32x128xf32>
    %63 = tpu.matmul %60, %62, %cst_59 {dimension_numbers = #tpu.dot_dimension_numbers<[1], [0], [0], [1], [0, 0, 1, 1], [], []>} : vector<32x128xbf16>, vector<128x128xbf16>, vector<32x128xf32> -> vector<32x128xf32>
    %64 = arith.addf %57, %63 : vector<32x128xf32>
    %c0_60 = arith.constant 0 : index
    %c0_61 = arith.constant 0 : index
    %65 = vector.load %arg6[%c0_60, %c0_61] : memref<1x128xf32, #tpu.memory_space<vmem>>, vector<1x128xf32>
    %66 = vector.broadcast %65 : vector<1x128xf32> to vector<32x128xf32>
    %67 = arith.addf %64, %66 : vector<32x128xf32>
    %cst_62 = arith.constant 0.000000e+00 : f32
    %68 = vector.broadcast %cst_62 : f32 to vector<32x128xf32>
    %69 = arith.maximumf %67, %68 : vector<32x128xf32>
    %70 = arith.truncf %69 : vector<32x128xf32> to vector<32x128xbf16>
    %c0_63 = arith.constant 0 : index
    %c0_64 = arith.constant 0 : index
    %71 = vector.load %arg7[%c0_63, %c0_64] : memref<128x128xbf16, #tpu.memory_space<vmem>>, vector<128x128xbf16>
    %cst_65 = arith.constant dense<0.000000e+00> : vector<32x128xf32>
    %72 = tpu.matmul %70, %71, %cst_65 {dimension_numbers = #tpu.dot_dimension_numbers<[1], [0], [0], [1], [0, 0, 1, 1], [], []>} : vector<32x128xbf16>, vector<128x128xbf16>, vector<32x128xf32> -> vector<32x128xf32>
    %c0_66 = arith.constant 0 : index
    %c0_67 = arith.constant 0 : index
    %73 = vector.load %arg8[%c0_66, %c0_67] : memref<1x128xf32, #tpu.memory_space<vmem>>, vector<1x128xf32>
    %74 = vector.broadcast %73 : vector<1x128xf32> to vector<32x128xf32>
    %75 = arith.addf %72, %74 : vector<32x128xf32>
    %76 = tpu.iota {dimensions = array<i32: 1>} : vector<32x128xi32>
    %c8_i32 = arith.constant 8 : i32
    %77 = vector.broadcast %c8_i32 : i32 to vector<32x128xi32>
    %78 = arith.cmpi slt, %76, %77 : vector<32x128xi32>
    %cst_68 = arith.constant -1.000000e+30 : f32
    %79 = vector.broadcast %cst_68 : f32 to vector<32x128xf32>
    %80 = arith.select %78, %75, %79 : vector<32x128xi1>, vector<32x128xf32>
    %81 = vector.shape_cast %80 : vector<32x128xf32> to vector<2x16x128xf32>
    %c0_69 = arith.constant 0 : index
    %c0_70 = arith.constant 0 : index
    %c0_71 = arith.constant 0 : index
    %82 = vector.load %arg9[%c0_69, %c0_70, %c0_71] : memref<2x16x128xf32, #tpu.memory_space<vmem>>, vector<2x16x128xf32>
    tpu.vector_store %arg9[%c0_69, %c0_70, %c0_71], %81 {strides = array<i32>} : memref<2x16x128xf32, #tpu.memory_space<vmem>>, vector<2x16x128xf32>,
    %cst_72 = arith.constant dense<0xFF800000> : vector<32xf32>
    %83 = vector.multi_reduction <maximumf>, %80, %cst_72 [1] : vector<32x128xf32> to vector<32xf32>
    %84 = vector.shape_cast %83 : vector<32xf32> to vector<32x1xf32>
    %85 = vector.broadcast %84 : vector<32x1xf32> to vector<32x128xf32>
    %86 = arith.subf %80, %85 : vector<32x128xf32>
    %87 = math.exp %86 : vector<32x128xf32>
    %cst_73 = arith.constant dense<0.000000e+00> : vector<32xf32>
    %88 = vector.multi_reduction <add>, %87, %cst_73 [1] : vector<32x128xf32> to vector<32xf32>
    %89 = vector.shape_cast %88 : vector<32xf32> to vector<32x1xf32>
    %90 = math.log %89 : vector<32x1xf32>
    %91 = arith.addf %84, %90 : vector<32x1xf32>
    %92 = vector.broadcast %1 : vector<32x1xi32> to vector<32x128xi32>
    %93 = arith.cmpi eq, %76, %92 : vector<32x128xi32>
    %cst_74 = arith.constant 0.000000e+00 : f32
    %94 = vector.broadcast %cst_74 : f32 to vector<32x128xf32>
    %95 = arith.select %93, %75, %94 : vector<32x128xi1>, vector<32x128xf32>
    %cst_75 = arith.constant dense<0.000000e+00> : vector<32xf32>
    %96 = vector.multi_reduction <add>, %95, %cst_75 [1] : vector<32x128xf32> to vector<32xf32>
    %97 = vector.shape_cast %96 : vector<32xf32> to vector<32x1xf32>
    %c0_i32 = arith.constant 0 : i32
    %98 = vector.broadcast %c0_i32 : i32 to vector<32x1xi32>
    %99 = arith.cmpi ne, %0, %98 : vector<32x1xi32>
    %100 = arith.extui %99 : vector<32x1xi1> to vector<32x1xi32>
    %101 = arith.sitofp %100 : vector<32x1xi32> to vector<32x1xf32>
    %102 = arith.subf %91, %97 : vector<32x1xf32>
    %103 = arith.mulf %102, %101 : vector<32x1xf32>
    %cst_76 = arith.constant dense<0.000000e+00> : vector<1xf32>
    %104 = vector.multi_reduction <add>, %103, %cst_76 [0] : vector<32x1xf32> to vector<1xf32>
    %105 = vector.shape_cast %104 : vector<1xf32> to vector<1x1xf32>
    %cst_77 = arith.constant dense<0.000000e+00> : vector<1xf32>
    %106 = vector.multi_reduction <add>, %101, %cst_77 [0] : vector<32x1xf32> to vector<1xf32>
    %107 = vector.shape_cast %106 : vector<1xf32> to vector<1x1xf32>
    %cst_78 = arith.constant 1.000000e+00 : f32
    %108 = vector.broadcast %cst_78 : f32 to vector<1x1xf32>
    %109 = arith.maximumf %107, %108 : vector<1x1xf32>
    %110 = tpu.reciprocal %109 : vector<1x1xf32> -> vector<1x1xf32>
    %111 = arith.mulf %105, %110 : vector<1x1xf32>
    %c0_79 = arith.constant 0 : index
    %c0_80 = arith.constant 0 : index
    %112 = vector.load %arg10[%c0_79, %c0_80] : memref<1x1xf32, #tpu.memory_space<vmem>>, vector<1x1xf32>
    tpu.vector_store %arg10[%c0_79, %c0_80], %111 {strides = array<i32>} : memref<1x1xf32, #tpu.memory_space<vmem>>, vector<1x1xf32>,
    return
  }
}

</mosaic_0001>

<bundles_post_ra>
// kernel: model_ed_forward.1
= control target key start
LH: loop header
LB: loop body
LE: loop exit
PB: predicated region body
PF: predicated region fallthrough
CT: control target
= control target key end

     0   :  { %16 = vsyncpa [#allocation4], 0  ;;  %s2098_s0 = inlined_call_operand.vmem [shape: s32[32,1], index: 0, kind: input, shape index: {}]   ;;  %s2099_s1 = inlined_call_operand.vmem [shape: s32[32,1], index: 1, kind: input, shape index: {}]   ;;  %s2100_s2 = inlined_call_operand.vmem [shape: bf16[128,128], index: 2, kind: input, shape index: {}]   ;;  %s2101_s3 = inlined_call_operand.hbm [shape: bf16[3,128,128], index: 3, kind: input, shape index: {}]   ;;  %s2102_s4 = inlined_call_operand.hbm [shape: bf16[3,128,128], index: 4, kind: input, shape index: {}]   ;;  %s2103_s5 = inlined_call_operand.vmem [shape: f32[1,128], index: 5, kind: input, shape index: {}]   ;;  %s2104_s6 = inlined_call_operand.vmem [shape: f32[1,128], index: 6, kind: input, shape index: {}]   ;;  %s2105_s7 = inlined_call_operand.hbm [shape: bf16[128,128], index: 7, kind: input, shape index: {}]   ;;  %s2106_s8 = inlined_call_operand.vmem [shape: f32[1,128], index: 8, kind: input, shape index: {}]   ;;  %s2107_s9 = inlined_call_operand.hbm [shape: f32[2,16,128], index: 9, kind: output, shape index: {0}]   ;;  %s2108_s10 = inlined_call_operand.hbm [shape: f32[1,1], index: 10, kind: output, shape index: {1}]  }
   0x1   :  { %17 = vsyncpa [#allocation7], 0 }
   0x2   :  { %18 = vsyncpa [#allocation5], 0 }
   0x3   :  { %19 = vsyncpa [#allocation11], 0  ;;  %s1829_s13 = smov [#allocation6]   ;;  %s1830_s15 = smov [#allocation3]  }
   0x4   :  { %s43_s14 = sshll.u32 %s1829_s13, 4  ;;  %s31_s16 = sshll.u32 %s1830_s15, 4  ;;  %s44_s14 = int_to_ptr.vmem [resolvable:$true] %s43_s14  ;;  %s1896_s16 = int_to_ptr.vmem [resolvable:$true] %s31_s16 }
   0x5   :  { %s1711_s19 = scalar_lea.hbm %s2102_s4, 3072 }
   0x6   :  { %p1712_p0 = scmp.ne.s32.totalorder %s2102_s4, %s1711_s19  ;;  %p1715_p1 = scmp.lt.u32.totalorder %s1711_s19, %s2102_s4 }
   0x8   :  { %p1717_p2 = pnand %p1715_p1, %p1712_p0 }
   0xa   :  { %1720 = shalt.err (!%p1717_p2)
}
   0xb   :  { %s1721_s24 = scalar_lea.vmem %s44_s14, 3072  ;;  %p1726_p4 = scmp.lt.s32.totalorder %s44_s14, %s44_s14 }
   0xc   :  { %p1722_p3 = scmp.ne.s32.totalorder %s44_s14, %s1721_s24  ;;  %p1727_p5 = scmp.lt.s32.totalorder %s1721_s24, %s1721_s24 }
   0xe   :  { %p1728_p6 = por %p1727_p5, %p1726_p4 }
  0x10   :  { %p1729_p7 = pnand %p1728_p6, %p1722_p3 }
  0x12   :  { %1732 = shalt.err (!%p1729_p7)
}
  0x13   :  { %s1831_s25 = smov 64   ;;  %s1832_s26 = smov 4  }
  0x14   :  { %49 = dma.hbm_to_vmem [thread:$0]  %s2102_s4, 3072, %s44_s14, [#allocation7], %s1831_s25, %s1831_s25, %s1832_s26  }
  0x15   :  { %s1733_s11 = scalar_lea.hbm %s2101_s3, 3072 }
  0x16   :  { %p1734_p8 = scmp.ne.s32.totalorder %s2101_s3, %s1733_s11  ;;  %p1737_p9 = scmp.lt.u32.totalorder %s1733_s11, %s2101_s3 }
  0x18   :  { %p1739_p10 = pnand %p1737_p9, %p1734_p8 }
  0x1a   :  { %1742 = shalt.err (!%p1739_p10)
}
  0x1b   :  { %s1743_s18 = scalar_lea.vmem %s1896_s16, 3072  ;;  %p1748_p12 = scmp.lt.s32.totalorder %s1896_s16, %s1896_s16 }
  0x1c   :  { %p1744_p11 = scmp.ne.s32.totalorder %s1896_s16, %s1743_s18  ;;  %p1749_p13 = scmp.lt.s32.totalorder %s1743_s18, %s1743_s18 }
  0x1e   :  { %p1750_p0 = por %p1749_p13, %p1748_p12 }
  0x20   :  { %p1751_p1 = pnand %p1750_p0, %p1744_p11 }
  0x22   :  { %1754 = shalt.err (!%p1751_p1)
}
  0x23   :  { %37 = dma.hbm_to_vmem [thread:$0]  %s2101_s3, 3072, %s1896_s16, [#allocation4], %s1831_s25, %s1831_s25, %s1832_s26  }
  0x24   :  { %s1833_s19 = smov [#allocation8]   ;;  %s1755_s23 = scalar_lea.hbm %s2105_s7, 1024 }
  0x25   :  { %s59_s20 = sshll.u32 %s1833_s19, 4  ;;  %p1756_p2 = scmp.ne.s32.totalorder %s2105_s7, %s1755_s23  ;;  %s60_s20 = int_to_ptr.vmem [resolvable:$true] %s59_s20 }
  0x26   :  { %p1759_p3 = scmp.lt.u32.totalorder %s1755_s23, %s2105_s7 }
  0x28   :  { %p1761_p4 = pnand %p1759_p3, %p1756_p2 }
  0x2a   :  { %1764 = shalt.err (!%p1761_p4)
}
  0x2b   :  { %s1765_s30 = scalar_lea.vmem %s60_s20, 1024  ;;  %p1770_p6 = scmp.lt.s32.totalorder %s60_s20, %s60_s20 }
  0x2c   :  { %p1766_p5 = scmp.ne.s32.totalorder %s60_s20, %s1765_s30  ;;  %p1771_p7 = scmp.lt.s32.totalorder %s1765_s30, %s1765_s30 }
  0x2e   :  { %p1772_p8 = por %p1771_p7, %p1770_p6 }
  0x30   :  { %p1773_p9 = pnand %p1772_p8, %p1766_p5 }
  0x32   :  { %1776 = shalt.err (!%p1773_p9)
}
  0x33   :  { %65 = dma.hbm_to_vmem [thread:$0]  %s2105_s7, 1024, %s60_s20, [#allocation7], %s1831_s25, %s1831_s25, %s1832_s26  }
  0x34   :  { %1821 = dma.done.wait [#allocation4], 3072  }
  0x35   :  { %1822 = vsyncadd [#allocation4], 4294964224 }
  0x36   :  { %1823 = dma.done.wait [#allocation7], 4096  }
  0x37   :  { %1824 = vsyncadd [#allocation7], 4294963200  ;;  %v1834_v0 = vmov 0   ;;  %v1835_v1 = vmov 0.0   ;;  %v1957_v2 = vld [vmem:[%s2098_s0 + $0x10] sm:$0xff]  ;;  %v1962_v3 = vld [vmem:[%s2098_s0] sm:$0xff]  ;;  %v92_v20 = vlaneseq }
  0x38   :  { %1628 = vset.pattern.permute.xlu1 %v1834_v0  ;;  %1627 = vset.pattern.permute.xlu0 %v1834_v0  ;;  %86 = vst [vmem:[#allocation2] sm:$0xff] %v1835_v1  ;;  %87 = vst [vmem:[#allocation2 + $0x8] sm:$0xff] %v1835_v1  ;;  %v1969_v4 = vld [vmem:[%s2098_s0 + $0x18] sm:$0xff]  ;;  %v1629_v5 = vld [vmem:[%s2100_s2] sm:$0xff]   ;;  %v1836_v26 = vmov 1.0|1.0  }
  0x39   :  { %88 = vst [vmem:[#allocation2 + $0x10] sm:$0x3] %v1835_v1  ;;  %89 = vst [vmem:[#allocation2 + $0x18] sm:$0xff] %v1835_v1  ;;  %101 = vperm.xlu1 %1628, %v1957_v2   ;;  %95 = vperm.xlu0 %1627, %v1962_v3   ;;  %v1977_v6 = vld [vmem:[%s2098_s0 + $0x8] sm:$0xff]  ;;  %v1631_v8 = vld [vmem:[%s2100_s2 + $0x10] sm:$0xff]   ;;  %v2005_v23 = vand.u32 127, %v92_v20 }
  0x3a   :  { %90 = vst [vmem:[#allocation2 + $0x20] sm:$0xff] %v1835_v1  ;;  %91 = vst [vmem:[#allocation2 + $0x28] sm:$0x3] %v1835_v1  ;;  %v1630_v7 = vld [vmem:[%s2100_s2 + $0x8] sm:$0xff]   ;;  %1439 = vmatprep.subr.bf16.mxu0 %v1629_v5  ;;  %v82_v9 = vld [vmem:[%s2099_s1] sm:$0xff]  ;;  %vm1196_vm11 = vcmp.ne.s32.totalorder %v1962_v3, 0 }
  0x3b   :  { %1440 = vmatpush3.bf16.msra.mxu0 %v1629_v5  ;;  %v1632_v10 = vld [vmem:[%s2100_s2 + $0x18] sm:$0xff]   ;;  %v1637_v11 = vld [vmem:[#allocation3 + $0x40] sm:$0xff]   ;;  %v1633_v13 = vld [vmem:[%s2100_s2 + $0x20] sm:$0xff]   ;;  %vm1119_vm6 = vcmp.lt.s32.totalorder %v2005_v23, 8  ;;  %vm1198_vm12 = vcmp.ne.s32.totalorder %v1957_v2, 0  ;;  %vm1216_vm13 = vcmask 7168  }
  0x3c   :  { %1441 = vmatprep.subr.bf16.mxu0 %v1630_v7  ;;  %1459 = vmatprep.subr.bf16.mxu1 %v1637_v11  ;;  %v1638_v12 = vld [vmem:[#allocation3 + $0x48] sm:$0xff]   ;;  %v1639_v14 = vld [vmem:[#allocation3 + $0x50] sm:$0xff]   ;;  %v1634_v15 = vld [vmem:[%s2100_s2 + $0x28] sm:$0xff]   ;;  %vm1197_vm14 = vcmp.ne.s32.totalorder %v1977_v6, 0  ;;  %vm1199_vm15 = vcmp.ne.s32.totalorder %v1969_v4, 0 }
  0x3d   :  { %104 = vperm.xlu1 %1628, %v1969_v4   ;;  %98 = vperm.xlu0 %1627, %v1977_v6   ;;  %v1640_v16 = vld [vmem:[#allocation3 + $0x58] sm:$0xff]   ;;  %v1635_v17 = vld [vmem:[%s2100_s2 + $0x30] sm:$0xff]   ;;  %v1636_v19 = vld [vmem:[%s2100_s2 + $0x38] sm:$0xff]  }
  0x3e   :  { %1460 = vmatpush3.bf16.msra.mxu1 %v1637_v11  ;;  %v1641_v18 = vld [vmem:[#allocation3 + $0x60] sm:$0xff]   ;;  %v1642_v27 = vld [vmem:[#allocation3 + $0x68] sm:$0xff]   ;;  %v1643_v28 = vld [vmem:[#allocation3 + $0x70] sm:$0xff]  }
  0x3f   :  { %1442 = vmatpush3.bf16.msra.mxu0 %v1630_v7  ;;  %1461 = vmatprep.subr.bf16.mxu1 %v1638_v12  ;;  %v1644_v29 = vld [vmem:[#allocation3 + $0x78] sm:$0xff]   ;;  %v1645_v30 = vld [vmem:[#allocation3] sm:$0xff]   ;;  %v1662_v32 = vld [vmem:[#allocation6 + $0x48] sm:$0xff]  }
  0x40   :  { %1443 = vmatprep.subr.bf16.mxu0 %v1631_v8  ;;  %v1661_v31 = vld [vmem:[#allocation6 + $0x40] sm:$0xff]   ;;  %v1663_v33 = vld [vmem:[#allocation6 + $0x50] sm:$0xff]   ;;  %v1664_v34 = vld [vmem:[#allocation6 + $0x58] sm:$0xff]  }
  0x41   :  { %1169 = vperm.xlu1 %1628, %v82_v9   ;;  %v1646_v41 = vld [vmem:[#allocation3 + $0x8] sm:$0xff]   ;;  %v1647_v42 = vld [vmem:[#allocation3 + $0x10] sm:$0xff]   ;;  %v1648_v46 = vld [vmem:[#allocation3 + $0x18] sm:$0xff]  }
  0x42   :  { %1462 = vmatpush3.bf16.msra.mxu1 %v1638_v12  ;;  %v1649_v47 = vld [vmem:[#allocation3 + $0x20] sm:$0xff]   ;;  %v1650_v48 = vld [vmem:[#allocation3 + $0x28] sm:$0xff]   ;;  %v1651_v49 = vld [vmem:[#allocation3 + $0x30] sm:$0xff]  }
  0x43   :  { %1444 = vmatpush3.bf16.msra.mxu0 %v1631_v8  ;;  %1463 = vmatprep.subr.bf16.mxu1 %v1639_v14  ;;  %v1652_v50 = vld [vmem:[#allocation3 + $0x38] sm:$0xff]   ;;  %v1653_v51 = vld [vmem:[#allocation3 + $0x80] sm:$0xff]   ;;  %v1654_v57 = vld [vmem:[#allocation3 + $0x88] sm:$0xff]  }
  0x44   :  { %1445 = vmatprep.subr.bf16.mxu0 %v1632_v10  ;;  %v1655_v59 = vld [vmem:[#allocation3 + $0x90] sm:$0xff]   ;;  %v1656_v60 = vld [vmem:[#allocation3 + $0x98] sm:$0xff]   ;;  %v1657_v61 = vld [vmem:[#allocation3 + $0xa0] sm:$0xff]  }
  0x45   :  { %v1658_v62 = vld [vmem:[#allocation3 + $0xa8] sm:$0xff]   ;;  %v1659_v63 = vld [vmem:[#allocation3 + $0xb0] sm:$0xff]   ;;  %v1660_v0 = vld [vmem:[#allocation3 + $0xb8] sm:$0xff]  }
  0x46   :  { %1464 = vmatpush3.bf16.msra.mxu1 %v1639_v14  ;;  %v1665_v9 = vld [vmem:[#allocation6 + $0x60] sm:$0xff]   ;;  %v1667_v11 = vld [vmem:[#allocation6 + $0x70] sm:$0xff]   ;;  %v1668_v12 = vld [vmem:[#allocation6 + $0x78] sm:$0xff]  }
  0x47   :  { %1446 = vmatpush3.bf16.msra.mxu0 %v1632_v10  ;;  %1465 = vmatprep.subr.bf16.mxu1 %v1640_v16  ;;  %v1666_v10 = vld [vmem:[#allocation6 + $0x68] sm:$0xff]   ;;  %v1685_v14 = vld [vmem:[#allocation8] sm:$0xff]   ;;  %v1320_v20 = vld [vmem:[%s2103_s5] ss:$0 sm:$0xff] }
  0x48   :  { %1447 = vmatprep.subr.bf16.mxu0 %v1633_v13 }
  0x4a   :  { %1466 = vmatpush3.bf16.msra.mxu1 %v1640_v16  ;;  %v1687_v16 = vld [vmem:[#allocation8 + $0x10] sm:$0xff]  }
  0x4b   :  { %1448 = vmatpush3.bf16.msra.mxu0 %v1633_v13  ;;  %1467 = vmatprep.subr.bf16.mxu1 %v1641_v18  ;;  %v1669_v13 = vld [vmem:[#allocation6] sm:$0xff]  }
  0x4c   :  { %1449 = vmatprep.subr.bf16.mxu0 %v1634_v15 }
  0x4e   :  { %1468 = vmatpush3.bf16.msra.mxu1 %v1641_v18  ;;  %v1689_v18 = vld [vmem:[#allocation8 + $0x20] sm:$0xff]  }
  0x4f   :  { %1450 = vmatpush3.bf16.msra.mxu0 %v1634_v15  ;;  %1469 = vmatprep.subr.bf16.mxu1 %v1642_v27  ;;  %v1686_v15 = vld [vmem:[#allocation8 + $0x8] sm:$0xff]  }
  0x50   :  { %1451 = vmatprep.subr.bf16.mxu0 %v1635_v17 }
  0x52   :  { %1470 = vmatpush3.bf16.msra.mxu1 %v1642_v27 }
  0x53   :  { %1452 = vmatpush3.bf16.msra.mxu0 %v1635_v17  ;;  %1471 = vmatprep.subr.bf16.mxu1 %v1643_v28  ;;  %v1688_v17 = vld [vmem:[#allocation8 + $0x18] sm:$0xff]  }
  0x54   :  { %1453 = vmatprep.subr.bf16.mxu0 %v1636_v19 }
  0x56   :  { %1472 = vmatpush3.bf16.msra.mxu1 %v1643_v28 }
  0x57   :  { %1454 = vmatpush3.bf16.msra.mxu0 %v1636_v19  ;;  %1473 = vmatprep.subr.bf16.mxu1 %v1644_v29  ;;  %v1690_v19 = vld [vmem:[#allocation8 + $0x28] sm:$0xff]  }
  0x58   :  { %1519 = vmatprep.subr.bf16.mxu0 %v1661_v31 }
  0x5a   :  { %1474 = vmatpush3.bf16.msra.mxu1 %v1644_v29 }
  0x5b   :  { %1479 = vmatprep.subr.bf16.mxu1 %v1645_v30 }
  0xb8   :  { %v102_v21 = vpop.permute.xlu1 %101  ;;  %v96_v22 = vpop.permute.xlu0 %95 }
  0xb9   :  { %vm108_vm0 = vcmp.eq.s32.totalorder %v2005_v23, %v102_v21  ;;  %vm106_vm3 = vcmp.eq.s32.totalorder %v2005_v23, %v96_v22 }
  0xbc   :  { %v105_v24 = vpop.permute.xlu1 %104  ;;  %v99_v25 = vpop.permute.xlu0 %98 }
  0xbd   :  { %vm109_vm1 = vcmp.eq.s32.totalorder %v2005_v23, %v105_v24  ;;  %vm107_vm2 = vcmp.eq.s32.totalorder %v2005_v23, %v99_v25 }
  0xbe   :  { %vm1294_vm4 = vmpackc.low %vm109_vm1, %vm108_vm0 }
  0xbf   :  { %vm1292_vm5 = vmpackc.low %vm107_vm2, %vm106_vm3 }
  0xc0   :  { %1455 = vmatprep.mubr.msk.bf16.mxu0 %vm1292_vm5, %v1836_v26 }
  0xc1   :  { %1456 = vmatmul.mubr.msk.bf16.vlgmr.msra.gmra.mrb[0].mxu0 %vm1294_vm4, %v1836_v26 }
  0xc2   :  { %1520 = vmatpush3.bf16.msra.mxu0 %v1661_v31 }
  0xc3   :  { %1521 = vmatprep.subr.bf16.mxu0 %v1662_v32 }
  0xc6   :  { %1522 = vmatpush3.bf16.msra.mxu0 %v1662_v32 }
  0xc7   :  { %1523 = vmatprep.subr.bf16.mxu0 %v1663_v33 }
  0xca   :  { %1524 = vmatpush3.bf16.msra.mxu0 %v1663_v33 }
  0xcb   :  { %1525 = vmatprep.subr.bf16.mxu0 %v1664_v34 }
  0xce   :  { %1526 = vmatpush3.bf16.msra.mxu0 %v1664_v34 }
  0xcf   :  { %1527 = vmatprep.subr.bf16.mxu0 %v1665_v9 }
  0xd2   :  { %1528 = vmatpush3.bf16.msra.mxu0 %v1665_v9 }
  0xd3   :  { %1529 = vmatprep.subr.bf16.mxu0 %v1666_v10 }
  0xd6   :  { %1530 = vmatpush3.bf16.msra.mxu0 %v1666_v10 }
  0xd7   :  { %1531 = vmatprep.subr.bf16.mxu0 %v1667_v11 }
  0xda   :  { %1532 = vmatpush3.bf16.msra.mxu0 %v1667_v11 }
  0xdb   :  { %1533 = vmatprep.subr.bf16.mxu0 %v1668_v12 }
  0xde   :  { %1534 = vmatpush3.bf16.msra.mxu0 %v1668_v12 }
  0xdf   :  { %1539 = vmatprep.subr.bf16.mxu0 %v1669_v13 }
 0x194   :  { %v1457_v35 = vpop.f32.mrb[0].mxu0 }
 0x195   :  { %235 = vst [vmem:[#allocation2 + $0x19] sm:$0xff] %v1457_v35  ;;  %v218_v36 = vpop.f32.mrb[1].mxu0 }
 0x196   :  { %233 = vst [vmem:[#allocation2 + $0x1] sm:$0xff] %v218_v36  ;;  %v1458_v37 = vpop.f32.mrb[2].mxu0 }
 0x197   :  { %236 = vst [vmem:[#allocation2 + $0x21] sm:$0xff] %v1458_v37  ;;  %v221_v38 = vpop.f32.mrb[3].mxu0  ;;  %v264_v39 = vpack.c.bf16 %v1458_v37, %v1457_v35  ;;  %v1671_v37 = vld [vmem:[#allocation6 + $0x10] sm:$0xff]  }
 0x198   :  { %234 = vst [vmem:[#allocation2 + $0x9] sm:$0xff] %v221_v38  ;;  %v263_v40 = vpack.c.bf16 %v221_v38, %v218_v36  ;;  %v1670_v36 = vld [vmem:[#allocation6 + $0x8] sm:$0xff]  }
 0x19a   :  { %1475 = vmatprep.mubr.bf16.mxu1 %v263_v40 }
 0x19b   :  { %1476 = vmatmul.mubr.bf16.vlgmr.msra.gmra.mrb[0].mxu1 %v264_v39 }
 0x19c   :  { %1480 = vmatpush3.bf16.msra.mxu1 %v1645_v30  ;;  %v239_v55 = vld [vmem:[#allocation2 + $0x18] sm:$0xff] }
 0x19d   :  { %1481 = vmatprep.subr.bf16.mxu1 %v1646_v41  ;;  %v237_v43 = vld [vmem:[#allocation2] sm:$0xff] }
 0x19e   :  { %v240_v52 = vld [vmem:[#allocation2 + $0x20] sm:$0xff] }
 0x19f   :  { %v238_v44 = vld [vmem:[#allocation2 + $0x8] sm:$0xff]  ;;  %v242_v56 = vpack.c.bf16 %v240_v52, %v239_v55  ;;  %v478_v5 = vld [vmem:[#allocation2 + $0x1a] sm:$0xff] }
 0x1a0   :  { %v241_v45 = vpack.c.bf16 %v238_v44, %v237_v43  ;;  %1482 = vmatpush3.bf16.msra.mxu1 %v1646_v41  ;;  %v476_v53 = vld [vmem:[#allocation2 + $0x2] sm:$0xff]  ;;  %v477_v54 = vld [vmem:[#allocation2 + $0xa] sm:$0xff]  ;;  %v1674_v43 = vld [vmem:[#allocation6 + $0x28] sm:$0xff]  }
 0x1a1   :  { %1483 = vmatprep.subr.bf16.mxu1 %v1647_v42  ;;  %v480_v58 = vpack.c.bf16 %v477_v54, %v476_v53  ;;  %v479_v7 = vld [vmem:[#allocation2 + $0x22] sm:$0xff]  ;;  %v1678_v52 = vld [vmem:[#allocation6 + $0x88] sm:$0xff]  }
 0x1a2   :  { %1495 = vmatprep.mubr.bf16.mxu1 %v241_v45  ;;  %v481_v8 = vpack.c.bf16 %v479_v7, %v478_v5  ;;  %v1672_v41 = vld [vmem:[#allocation6 + $0x18] sm:$0xff]   ;;  %v1675_v44 = vld [vmem:[#allocation6 + $0x30] sm:$0xff]  }
 0x1a3   :  { %v1676_v45 = vld [vmem:[#allocation6 + $0x38] sm:$0xff]   ;;  %v1679_v54 = vld [vmem:[#allocation6 + $0x90] sm:$0xff]  }
 0x1a4   :  { %1484 = vmatpush3.bf16.msra.mxu1 %v1647_v42  ;;  %v1673_v42 = vld [vmem:[#allocation6 + $0x20] sm:$0xff]   ;;  %v1680_v55 = vld [vmem:[#allocation6 + $0x98] sm:$0xff]   ;;  %v1345_v5 = vld [vmem:[%s2104_s6] ss:$0 sm:$0xff] }
 0x1a5   :  { %1485 = vmatprep.subr.bf16.mxu1 %v1648_v46 }
 0x1a8   :  { %1486 = vmatpush3.bf16.msra.mxu1 %v1648_v46  ;;  %v1677_v46 = vld [vmem:[#allocation6 + $0x80] sm:$0xff]  }
 0x1a9   :  { %1487 = vmatprep.subr.bf16.mxu1 %v1649_v47 }
 0x1ac   :  { %1488 = vmatpush3.bf16.msra.mxu1 %v1649_v47 }
 0x1ad   :  { %1489 = vmatprep.subr.bf16.mxu1 %v1650_v48 }
 0x1b0   :  { %1490 = vmatpush3.bf16.msra.mxu1 %v1650_v48 }
 0x1b1   :  { %1491 = vmatprep.subr.bf16.mxu1 %v1651_v49 }
 0x1b4   :  { %1492 = vmatpush3.bf16.msra.mxu1 %v1651_v49 }
 0x1b5   :  { %1493 = vmatprep.subr.bf16.mxu1 %v1652_v50 }
 0x1b8   :  { %1494 = vmatpush3.bf16.msra.mxu1 %v1652_v50 }
 0x1b9   :  { %1499 = vmatprep.subr.bf16.mxu1 %v1653_v51 }
 0x1bb   :  { %1496 = vmatmul.mubr.bf16.vlgmr.msra.gmra.mrb[0].mxu1 %v242_v56  ;;  %v1681_v56 = vld [vmem:[#allocation6 + $0xa0] sm:$0xff]  }
 0x1bc   :  { %1500 = vmatpush3.bf16.msra.mxu1 %v1653_v51  ;;  %1515 = vmatprep.mubr.bf16.mxu1 %v480_v58  ;;  %v1683_v58 = vld [vmem:[#allocation6 + $0xb0] sm:$0xff]  }
 0x1bd   :  { %1501 = vmatprep.subr.bf16.mxu1 %v1654_v57 }
 0x1c0   :  { %1502 = vmatpush3.bf16.msra.mxu1 %v1654_v57  ;;  %v1682_v57 = vld [vmem:[#allocation6 + $0xa8] sm:$0xff]  }
 0x1c1   :  { %1503 = vmatprep.subr.bf16.mxu1 %v1655_v59 }
 0x1c4   :  { %1504 = vmatpush3.bf16.msra.mxu1 %v1655_v59  ;;  %v1684_v59 = vld [vmem:[#allocation6 + $0xb8] sm:$0xff]  }
 0x1c5   :  { %1505 = vmatprep.subr.bf16.mxu1 %v1656_v60 }
 0x1c8   :  { %1506 = vmatpush3.bf16.msra.mxu1 %v1656_v60 }
 0x1c9   :  { %1507 = vmatprep.subr.bf16.mxu1 %v1657_v61 }
 0x1cc   :  { %1508 = vmatpush3.bf16.msra.mxu1 %v1657_v61 }
 0x1cd   :  { %1509 = vmatprep.subr.bf16.mxu1 %v1658_v62 }
 0x1d0   :  { %1510 = vmatpush3.bf16.msra.mxu1 %v1658_v62 }
 0x1d1   :  { %1511 = vmatprep.subr.bf16.mxu1 %v1659_v63 }
 0x1d4   :  { %1512 = vmatpush3.bf16.msra.mxu1 %v1659_v63  ;;  %v1691_v63 = vld [vmem:[#allocation8 + $0x30] sm:$0xff]  }
 0x1d5   :  { %1513 = vmatprep.subr.bf16.mxu1 %v1660_v0 }
 0x1d8   :  { %1514 = vmatpush3.bf16.msra.mxu1 %v1660_v0  ;;  %v1692_v0 = vld [vmem:[#allocation8 + $0x38] sm:$0xff]  }
 0x1d9   :  { %1579 = vmatprep.subr.bf16.mxu1 %v1685_v14 }
 0x1db   :  { %1516 = vmatmul.mubr.bf16.vlgmr.msra.gmra.mrb[0].mxu1 %v481_v8 }
 0x1dc   :  { %1580 = vmatpush3.bf16.msra.mxu1 %v1685_v14 }
 0x1dd   :  { %1581 = vmatprep.subr.bf16.mxu1 %v1686_v15 }
 0x1e0   :  { %1582 = vmatpush3.bf16.msra.mxu1 %v1686_v15 }
 0x1e1   :  { %1583 = vmatprep.subr.bf16.mxu1 %v1687_v16 }
 0x1e4   :  { %1584 = vmatpush3.bf16.msra.mxu1 %v1687_v16 }
 0x1e5   :  { %1585 = vmatprep.subr.bf16.mxu1 %v1688_v17 }
 0x1e8   :  { %1586 = vmatpush3.bf16.msra.mxu1 %v1688_v17 }
 0x1e9   :  { %1587 = vmatprep.subr.bf16.mxu1 %v1689_v18 }
 0x1ec   :  { %1588 = vmatpush3.bf16.msra.mxu1 %v1689_v18 }
 0x1ed   :  { %1589 = vmatprep.subr.bf16.mxu1 %v1690_v19 }
 0x1f0   :  { %1590 = vmatpush3.bf16.msra.mxu1 %v1690_v19 }
 0x1f1   :  { %1591 = vmatprep.subr.bf16.mxu1 %v1691_v63 }
 0x1f4   :  { %1592 = vmatpush3.bf16.msra.mxu1 %v1691_v63  ;;  %v2051_v63 = vsel %vm1198_vm12, 1.0, %v1835_v1 }
 0x1f5   :  { %1593 = vmatprep.subr.bf16.mxu1 %v1692_v0 }
 0x1f8   :  { %1594 = vmatpush3.bf16.msra.mxu1 %v1692_v0 }
 0x2ae   :  { %v1517_v21 = vpop.f32.mrb[0].mxu1 }
 0x2af   :  { %v609_v22 = vadd.f32 %v1517_v21, %v1320_v20  ;;  %v581_v24 = vpop.f32.mrb[1].mxu1  ;;  %v1346_v21 = vld [vmem:[%s2106_s8] ss:$0 sm:$0xff] }
 0x2b0   :  { %v607_v25 = vadd.f32 %v1320_v20, %v581_v24  ;;  %v1518_v26 = vpop.f32.mrb[2].mxu1 }
 0x2b1   :  { %v613_v27 = vmax.f32 %v609_v22, 0.0  ;;  %v610_v28 = vadd.f32 %v1518_v26, %v1320_v20  ;;  %v584_v29 = vpop.f32.mrb[3].mxu1 }
 0x2b2   :  { %v611_v30 = vmax.f32 %v607_v25, 0.0  ;;  %v608_v31 = vadd.f32 %v1320_v20, %v584_v29 }
 0x2b3   :  { %617 = vst [vmem:[#allocation2 + $0x19] sm:$0xff] %v613_v27  ;;  %v614_v32 = vmax.f32 %v610_v28, 0.0 }
 0x2b4   :  { %615 = vst [vmem:[#allocation2 + $0x1] sm:$0xff] %v611_v30  ;;  %v612_v33 = vmax.f32 %v608_v31, 0.0 }
 0x2b5   :  { %618 = vst [vmem:[#allocation2 + $0x21] sm:$0xff] %v614_v32  ;;  %v646_v34 = vpack.c.bf16 %v614_v32, %v613_v27 }
 0x2b6   :  { %616 = vst [vmem:[#allocation2 + $0x9] sm:$0xff] %v612_v33  ;;  %v645_v35 = vpack.c.bf16 %v612_v33, %v611_v30 }
 0x2b8   :  { %1535 = vmatprep.mubr.bf16.mxu0 %v645_v35  ;;  %v84_v35 = vld [vmem:[%s2099_s1 + $0x10] sm:$0xff] }
 0x2b9   :  { %1536 = vmatmul.mubr.bf16.vlgmr.msra.gmra.mrb[4].mxu0 %v646_v34 }
 0x2ba   :  { %1540 = vmatpush3.bf16.msra.mxu0 %v1669_v13  ;;  %v621_v50 = vld [vmem:[#allocation2 + $0x18] sm:$0xff] }
 0x2bb   :  { %1541 = vmatprep.subr.bf16.mxu0 %v1670_v36  ;;  %v619_v38 = vld [vmem:[#allocation2] sm:$0xff] }
 0x2bc   :  { %v622_v47 = vld [vmem:[#allocation2 + $0x20] sm:$0xff] }
 0x2bd   :  { %v620_v39 = vld [vmem:[#allocation2 + $0x8] sm:$0xff]  ;;  %v624_v51 = vpack.c.bf16 %v622_v47, %v621_v50  ;;  %v860_v60 = vld [vmem:[#allocation2 + $0x1a] sm:$0xff] }
 0x2be   :  { %v623_v40 = vpack.c.bf16 %v620_v39, %v619_v38  ;;  %1542 = vmatpush3.bf16.msra.mxu0 %v1670_v36  ;;  %v858_v48 = vld [vmem:[#allocation2 + $0x2] sm:$0xff]  ;;  %v859_v49 = vld [vmem:[#allocation2 + $0xa] sm:$0xff]  ;;  %v85_v36 = vld [vmem:[%s2099_s1 + $0x18] sm:$0xff]  ;;  %v1170_v38 = vpop.permute.xlu1 %1169 }
 0x2bf   :  { %1543 = vmatprep.subr.bf16.mxu0 %v1671_v37  ;;  %v862_v53 = vpack.c.bf16 %v859_v49, %v858_v48  ;;  %v861_v61 = vld [vmem:[#allocation2 + $0x22] sm:$0xff]  ;;  %vm1180_vm7 = vcmp.eq.s32.totalorder %v2005_v23, %v1170_v38 }
 0x2c0   :  { %1555 = vmatprep.mubr.bf16.mxu0 %v623_v40  ;;  %v863_v62 = vpack.c.bf16 %v861_v61, %v860_v60 }
 0x2c2   :  { %1544 = vmatpush3.bf16.msra.mxu0 %v1671_v37  ;;  %v83_v37 = vld [vmem:[%s2099_s1 + $0x8] sm:$0xff]  ;;  %s1837_s1 = smov [#allocation9]  }
 0x2c3   :  { %1545 = vmatprep.subr.bf16.mxu0 %v1672_v41  ;;  %s1253_s14 = sshll.u32 %s1837_s1, 4  ;;  %s1254_s14 = int_to_ptr.vmem [resolvable:$true] %s1253_s14 }
 0x2c4   :  { %s1777_s19 = scalar_lea.vmem %s1254_s14, 512  ;;  %p1782_p11 = scmp.lt.s32.totalorder %s1254_s14, %s1254_s14 }
 0x2c5   :  { %p1778_p10 = scmp.ne.s32.totalorder %s1254_s14, %s1777_s19  ;;  %p1783_p12 = scmp.lt.s32.totalorder %s1777_s19, %s1777_s19 }
 0x2c6   :  { %1546 = vmatpush3.bf16.msra.mxu0 %v1672_v41 }
 0x2c7   :  { %1547 = vmatprep.subr.bf16.mxu0 %v1673_v42  ;;  %p1784_p13 = por %p1783_p12, %p1782_p11 }
 0x2c9   :  { %p1785_p0 = pnand %p1784_p13, %p1778_p10 }
 0x2ca   :  { %1548 = vmatpush3.bf16.msra.mxu0 %v1673_v42 }
 0x2cb   :  { %1549 = vmatprep.subr.bf16.mxu0 %v1674_v43 }
 0x2ce   :  { %1550 = vmatpush3.bf16.msra.mxu0 %v1674_v43 }
 0x2cf   :  { %1551 = vmatprep.subr.bf16.mxu0 %v1675_v44 }
 0x2d2   :  { %1552 = vmatpush3.bf16.msra.mxu0 %v1675_v44 }
 0x2d3   :  { %1553 = vmatprep.subr.bf16.mxu0 %v1676_v45 }
 0x2d6   :  { %1554 = vmatpush3.bf16.msra.mxu0 %v1676_v45 }
 0x2d7   :  { %1559 = vmatprep.subr.bf16.mxu0 %v1677_v46 }
 0x2d9   :  { %1556 = vmatmul.mubr.bf16.vlgmr.msra.gmra.mrb[4].mxu0 %v624_v51 }
 0x2da   :  { %1560 = vmatpush3.bf16.msra.mxu0 %v1677_v46  ;;  %1575 = vmatprep.mubr.bf16.mxu0 %v862_v53 }
 0x2db   :  { %1561 = vmatprep.subr.bf16.mxu0 %v1678_v52 }
 0x2de   :  { %1562 = vmatpush3.bf16.msra.mxu0 %v1678_v52 }
 0x2df   :  { %1563 = vmatprep.subr.bf16.mxu0 %v1679_v54 }
 0x2e2   :  { %1564 = vmatpush3.bf16.msra.mxu0 %v1679_v54 }
 0x2e3   :  { %1565 = vmatprep.subr.bf16.mxu0 %v1680_v55 }
 0x2e6   :  { %1566 = vmatpush3.bf16.msra.mxu0 %v1680_v55 }
 0x2e7   :  { %1567 = vmatprep.subr.bf16.mxu0 %v1681_v56 }
 0x2ea   :  { %1568 = vmatpush3.bf16.msra.mxu0 %v1681_v56 }
 0x2eb   :  { %1569 = vmatprep.subr.bf16.mxu0 %v1682_v57 }
 0x2ee   :  { %1570 = vmatpush3.bf16.msra.mxu0 %v1682_v57 }
 0x2ef   :  { %1571 = vmatprep.subr.bf16.mxu0 %v1683_v58 }
 0x2f2   :  { %1572 = vmatpush3.bf16.msra.mxu0 %v1683_v58 }
 0x2f3   :  { %1573 = vmatprep.subr.bf16.mxu0 %v1684_v59 }
 0x2f6   :  { %1574 = vmatpush3.bf16.msra.mxu0 %v1684_v59 }
 0x2f9   :  { %1576 = vmatmul.mubr.bf16.vlgmr.msra.gmra.mrb[4].mxu0 %v863_v62  ;;  %v1355_v62 = vsel %vm1196_vm11, 1.0, %v1835_v1 }
 0x2fa   :  { %v1230_v0 = vsel %vm1216_vm13, %v1355_v62, 0.0 }
 0x3cc   :  { %v1577_v7 = vpop.f32.mrb[4].mxu0 }
 0x3cd   :  { %v991_v8 = vadd.f32 %v1577_v7, %v1345_v5  ;;  %v963_v9 = vpop.f32.mrb[5].mxu0 }
 0x3ce   :  { %v989_v10 = vadd.f32 %v1345_v5, %v963_v9  ;;  %v1578_v11 = vpop.f32.mrb[6].mxu0 }
 0x3cf   :  { %v992_v12 = vadd.f32 %v1578_v11, %v1345_v5  ;;  %v966_v13 = vpop.f32.mrb[7].mxu0  ;;  %v995_v15 = vmax.f32 %v991_v8, 0.0  ;;  %v2060_v8 = vsel %vm1199_vm15, 1.0, %v1835_v1 }
 0x3d0   :  { %v990_v14 = vadd.f32 %v1345_v5, %v966_v13  ;;  %v993_v17 = vmax.f32 %v989_v10, 0.0  ;;  %v1356_v5 = vsel %vm1197_vm14, 1.0, %v1835_v1  ;;  %v1235_v6 = vsel %vm1216_vm13, %v2060_v8, 0.0 }
 0x3d1   :  { %v996_v16 = vmax.f32 %v992_v12, 0.0  ;;  %v1231_v3 = vsel %vm1216_vm13, %v1356_v5, 0.0 }
 0x3d2   :  { %v994_v18 = vmax.f32 %v990_v14, 0.0  ;;  %v1232_v2 = vadd.f32 %v1231_v3, %v1230_v0 }
 0x3d3   :  { %v998_v19 = vpack.c.bf16 %v996_v16, %v995_v15 }
 0x3d4   :  { %v997_v20 = vpack.c.bf16 %v994_v18, %v993_v17 }
 0x3d6   :  { %1595 = vmatprep.mubr.bf16.mxu1 %v997_v20 }
 0x3d7   :  { %1596 = vmatmul.mubr.bf16.vlgmr.msra.gmra.mrb[4].mxu1 %v998_v19 }
 0x4aa   :  { %v1597_v22 = vpop.f32.mrb[4].mxu1 }
 0x4ab   :  { %v1113_v24 = vadd.f32 %v1597_v22, %v1346_v21  ;;  %v1104_v25 = vpop.f32.mrb[5].mxu1 }
 0x4ac   :  { %v1105_v26 = vadd.f32 %v1346_v21, %v1104_v25  ;;  %v1598_v27 = vpop.f32.mrb[6].mxu1 }
 0x4ad   :  { %v1116_v28 = vadd.f32 %v1598_v27, %v1346_v21  ;;  %v1107_v29 = vpop.f32.mrb[7].mxu1  ;;  %v1122_v30 = vsel %vm1119_vm6, %v1113_v24, -1e+30 }
 0x4ae   :  { %v1108_v31 = vadd.f32 %v1346_v21, %v1107_v29  ;;  %1132 = vmax.xlane.f32.xlu0 %v1122_v30  ;;  %1126 = vst [vmem:[#allocation9 + $0x10] sm:$0xff] %v1122_v30  ;;  %v1120_v32 = vsel %vm1119_vm6, %v1105_v26, -1e+30  ;;  %v1184_v54 = vsel %vm1180_vm7, %v1105_v26, 0.0 }
 0x4af   :  { %1124 = vst [vmem:[#allocation9] sm:$0xff] %v1120_v32  ;;  %v1123_v33 = vsel %vm1119_vm6, %v1116_v28, -1e+30 }
 0x4b0   :  { %v1121_v34 = vsel %vm1119_vm6, %v1108_v31, -1e+30  ;;  %1127 = vst [vmem:[#allocation9 + $0x18] sm:$0xff] %v1123_v33 }
 0x4b1   :  { %1130 = vmax.xlane.f32.xlu1 %v1121_v34  ;;  %1125 = vst [vmem:[#allocation9 + $0x8] sm:$0xff] %v1121_v34 }
 0x4b2   :  { %1128 = vmax.xlane.f32.xlu0 %v1120_v32 }
 0x4b6   :  { %1134 = vmax.xlane.f32.xlu0 %v1123_v33 }
 0x4c2   :  { %1175 = vperm.xlu1 %1628, %v84_v35  }
 0x4c6   :  { %1178 = vperm.xlu1 %1628, %v85_v36  }
 0x4cc   :  { %1172 = vperm.xlu0 %1627, %v83_v37  }
 0x53b   :  { %v2030_v39 = vpop.xlane.xlu0 %1132 }
 0x53c   :  { %v1138_v43 = vsub.f32 %v1122_v30, %v2030_v39 }
 0x53e   :  { %v2032_v40 = vpop.xlane.xlu1 %1130  ;;  %v1144_v48 = vmul.f32 1.442695, %v1138_v43 }
 0x53f   :  { %v1137_v41 = vsub.f32 %v1121_v34, %v2032_v40  ;;  %v2035_v42 = vpop.xlane.xlu0 %1128 }
 0x540   :  { %v1136_v44 = vsub.f32 %v1120_v32, %v2035_v42 }
 0x541   :  { %v1142_v45 = vmul.f32 1.442695, %v1137_v41 }
 0x542   :  { %v1140_v46 = vmul.f32 1.442695, %v1136_v44  ;;  %v1176_v53 = vpop.permute.xlu1 %1175 }
 0x543   :  { %1693 = vpow2.f32 %v1142_v45  ;;  %v2039_v47 = vpop.xlane.xlu0 %1134  ;;  %vm1182_vm8 = vcmp.eq.s32.totalorder %v2005_v23, %v1176_v53 }
 0x544   :  { %1695 = vpow2.f32 %v1140_v46  ;;  %v1139_v49 = vsub.f32 %v1123_v33, %v2039_v47  ;;  %v1186_v57 = vsel %vm1182_vm8, %v1113_v24, 0.0 }
 0x545   :  { %1697 = vpow2.f32 %v1144_v48 }
 0x546   :  { %v1146_v50 = vmul.f32 1.442695, %v1139_v49  ;;  %v1179_v59 = vpop.permute.xlu1 %1178 }
 0x547   :  { %vm1183_vm10 = vcmp.eq.s32.totalorder %v2005_v23, %v1179_v59 }
 0x548   :  { %1699 = vpow2.f32 %v1146_v50  ;;  %v1187_v61 = vsel %vm1183_vm10, %v1116_v28, 0.0 }
 0x54b   :  { %v1173_v56 = vpop.permute.xlu0 %1172 }
 0x54c   :  { %vm1181_vm9 = vcmp.eq.s32.totalorder %v2005_v23, %v1173_v56  ;;  %v1233_v23 = vsel %vm1216_vm13, %v2051_v63, 0.0 }
 0x54d   :  { %v1694_v51 = vpop.eup %1693  ;;  %v1185_v60 = vsel %vm1181_vm9, %v1108_v31, 0.0  ;;  %v1234_v7 = vadd.f32 %v1233_v23, %v1232_v2 }
 0x54e   :  { %v1696_v52 = vpop.eup %1695  ;;  %1150 = vadd.xlane.f32.xlu1 %v1694_v51 }
 0x54f   :  { %1148 = vadd.xlane.f32.xlu0 %v1696_v52  ;;  %v1698_v55 = vpop.eup %1697  ;;  %v1236_v9 = vadd.f32 %v1235_v6, %v1234_v7 }
 0x552   :  { %1188 = vadd.xlane.f32.xlu1 %v1184_v54  ;;  %v1700_v58 = vpop.eup %1699 }
 0x553   :  { %1152 = vadd.xlane.f32.xlu0 %v1698_v55 }
 0x556   :  { %1192 = vadd.xlane.f32.xlu1 %v1186_v57 }
 0x557   :  { %1154 = vadd.xlane.f32.xlu0 %v1700_v58 }
 0x55b   :  { %1190 = vadd.xlane.f32.xlu0 %v1185_v60 }
 0x55f   :  { %1194 = vadd.xlane.f32.xlu0 %v1187_v61 }
 0x560   :  { %1788 = shalt.err (!%p1785_p0)
}
 0x561   :  { %s1789_s22 = scalar_lea.hbm %s2107_s9, 512 }
 0x562   :  { %p1790_p1 = scmp.ne.s32.totalorder %s2107_s9, %s1789_s22  ;;  %p1793_p2 = scmp.lt.u32.totalorder %s1789_s22, %s2107_s9 }
 0x564   :  { %p1795_p3 = pnand %p1793_p2, %p1790_p1 }
 0x566   :  { %1798 = shalt.err (!%p1795_p3)
}
 0x567   :  { %s1838_s28 = smov 128   ;;  %s1839_s29 = smov 8   ;;  %v1237_v10 = vrot.slane %v1236_v9, 4  ;;  %vm1246_vm0 = vcmask 0  }
 0x568   :  { %1259 = dma.vmem_to_hbm [thread:$0]  %s1254_s14, 512, %s2107_s9, [#allocation5], %s1838_s28, %s1838_s28, %s1839_s29  }
 0x569   :  { %v1238_v12 = vadd.f32 %v1237_v10, %v1236_v9  ;;  %s1840_s9 = smov [#allocation10]  }
 0x56a   :  { %s1266_s16 = sshll.u32 %s1840_s9, 4  ;;  %s1267_s16 = int_to_ptr.vmem [resolvable:$true] %s1266_s16 }
 0x56b   :  { %v1239_v15 = vrot.slane %v1238_v12, 2  ;;  %s1799_s7 = scalar_lea.vmem %s1267_s16, 16  ;;  %s1803_s25 = scalar_lea.vmem %s1267_s16, 32 }
 0x56c   :  { %p1800_p4 = scmp.ne.s32.totalorder %s1267_s16, %s1799_s7  ;;  %p1804_p5 = scmp.lt.s32.totalorder %s1267_s16, %s1267_s16 }
 0x56d   :  { %v1240_v24 = vadd.f32 %v1239_v15, %v1238_v12  ;;  %p1805_p6 = scmp.lt.s32.totalorder %s1803_s25, %s1799_s7 }
 0x56f   :  { %v1241_v32 = vrot.slane %v1240_v24, 1  ;;  %p1806_p7 = por %p1805_p6, %p1804_p5 }
 0x571   :  { %v1242_v43 = vadd.f32 %v1241_v32, %v1240_v24  ;;  %p1807_p8 = pnand %p1806_p7, %p1800_p4 }
 0x573   :  { %v1243_v49 = vmax.f32 %v1242_v43, 1.0 }
 0x5db   :  { %v1151_v1 = vpop.xlane.xlu1 %1150 }
 0x5dc   :  { %1701 = vlog2.f32 %v1151_v1  ;;  %v1149_v4 = vpop.xlane.xlu0 %1148 }
 0x5dd   :  { %1703 = vlog2.f32 %v1149_v4 }
 0x5df   :  { %v1189_v19 = vpop.xlane.xlu1 %1188 }
 0x5e0   :  { %v1153_v11 = vpop.xlane.xlu0 %1152 }
 0x5e1   :  { %1705 = vlog2.f32 %v1153_v11 }
 0x5e3   :  { %v1193_v34 = vpop.xlane.xlu1 %1192 }
 0x5e4   :  { %v1155_v13 = vpop.xlane.xlu0 %1154 }
 0x5e5   :  { %1707 = vlog2.f32 %v1155_v13 }
 0x5e6   :  { %v1702_v14 = vpop.eup %1701  ;;  %1709 = vrcp.f32 %v1243_v49 }
 0x5e7   :  { %v1704_v16 = vpop.eup %1703  ;;  %v1159_v17 = vmul.f32 0.6931472, %v1702_v14 }
 0x5e8   :  { %v1157_v18 = vmul.f32 0.6931472, %v1704_v16  ;;  %v1191_v22 = vpop.xlane.xlu0 %1190 }
 0x5e9   :  { %v1165_v20 = vadd.f32 %v1159_v17, %v2032_v40 }
 0x5ea   :  { %v1164_v21 = vadd.f32 %v1157_v18, %v2035_v42 }
 0x5eb   :  { %v1706_v25 = vpop.eup %1705  ;;  %v1209_v26 = vsub.f32 %v1165_v20, %v1191_v22 }
 0x5ec   :  { %v1208_v27 = vsub.f32 %v1164_v21, %v1189_v19  ;;  %v1161_v28 = vmul.f32 0.6931472, %v1706_v25  ;;  %v1195_v44 = vpop.xlane.xlu0 %1194 }
 0x5ed   :  { %v1213_v29 = vmul.f32 %v1356_v5, %v1209_v26 }
 0x5ee   :  { %v1212_v30 = vmul.f32 %v1355_v62, %v1208_v27  ;;  %v1166_v31 = vadd.f32 %v1161_v28, %v2030_v39 }
 0x5ef   :  { %v1708_v33 = vpop.eup %1707  ;;  %v1218_v35 = vsel %vm1216_vm13, %v1213_v29, 0.0 }
 0x5f0   :  { %v1217_v36 = vsel %vm1216_vm13, %v1212_v30, 0.0  ;;  %v1210_v37 = vsub.f32 %v1166_v31, %v1193_v34  ;;  %v1163_v38 = vmul.f32 0.6931472, %v1708_v33  ;;  %v1710_v57 = vpop.eup %1709 }
 0x5f1   :  { %v1219_v40 = vadd.f32 %v1218_v35, %v1217_v36 }
 0x5f2   :  { %v1214_v41 = vmul.f32 %v2051_v63, %v1210_v37  ;;  %v1167_v42 = vadd.f32 %v1163_v38, %v2039_v47 }
 0x5f4   :  { %v1220_v45 = vsel %vm1216_vm13, %v1214_v41, 0.0  ;;  %v1211_v46 = vsub.f32 %v1167_v42, %v1195_v44 }
 0x5f5   :  { %v1221_v39 = vadd.f32 %v1220_v45, %v1219_v40 }
 0x5f6   :  { %v1215_v48 = vmul.f32 %v2060_v8, %v1211_v46 }
 0x5f8   :  { %v1222_v50 = vsel %vm1216_vm13, %v1215_v48, 0.0 }
 0x5f9   :  { %v1223_v51 = vadd.f32 %v1222_v50, %v1221_v39 }
 0x5fb   :  { %v1224_v52 = vrot.slane %v1223_v51, 4 }
 0x5fd   :  { %v1225_v53 = vadd.f32 %v1224_v52, %v1223_v51 }
 0x5ff   :  { %v1226_v54 = vrot.slane %v1225_v53, 2 }
 0x601   :  { %v1227_v55 = vadd.f32 %v1226_v54, %v1225_v53 }
 0x603   :  { %v1228_v56 = vrot.slane %v1227_v55, 1 }
 0x605   :  { %v1229_v47 = vadd.f32 %v1228_v56, %v1227_v55 }
 0x607   :  { %v1245_v58 = vmul.f32 %v1710_v57, %v1229_v47 }
 0x609   :  { %1247 = vst.msk [vmem:[#allocation10] sm:$0x1] %vm1246_vm0, %v1245_v58 }
 0x60a   :  { %1810 = shalt.err (!%p1807_p8)
}
 0x60b   :  { %s1811_s5 = scalar_lea.hbm %s2108_s10, 16 }
 0x60c   :  { %p1812_p9 = scmp.ne.s32.totalorder %s2108_s10, %s1811_s5  ;;  %p1815_p10 = scmp.lt.u32.totalorder %s1811_s5, %s2108_s10 }
 0x60e   :  { %p1817_p11 = pnand %p1815_p10, %p1812_p9 }
 0x610   :  { %1820 = shalt.err (!%p1817_p11)
}
 0x611   :  { %1269 = dma.vmem_to_hbm [thread:$0]  %s1267_s16, 16, %s2108_s10, [#allocation11]  }
 0x612   :  { %1825 = dma.done.wait [#allocation5], 512  }
 0x613   :  { %1826 = vsyncadd [#allocation5], 4294966784 }
 0x614   :  { %1827 = dma.done.wait [#allocation11], 16  }
 0x615   :  { %1828 = vsyncadd [#allocation11], 4294967280 }
 0x616   :  { %1276 = vsyncpa [#allocation4], 1 }
 0x617   :  { %1277 = vsyncpa [#allocation7], 1 }
 0x618   :  { %1278 = vsyncpa [#allocation5], 1 }
 0x619   :  { %1279 = vsyncpa [#allocation11], 1 }

</bundles_post_ra>
